<compile_context>
chip_gen: v7x
topology: tpu7x:2x2x1
jax: 0.10.0
libtpu: 0.0.40
codegen_flags: <defaults>
</compile_context>

<pallas_src>
import jax
import jax.numpy as jnp
from jax.experimental import pallas as pl
from jax.experimental.pallas import tpu as pltpu

D_FEAT = 200          # PCNN / PCM_CNN / PGNN / lin_vc output feature dim
D_VC_IN = 100         # lin_vc input dim
SEG = 256             # lane-aligned (multiple of 128) segment width in kernel output
K_PAD = 128           # lin_vc contraction dim padded to one MXU tile
N_SEG = 4             # number of concatenated feature blocks
D_OUT = N_SEG * D_FEAT       # 800  (module's concat width)
D_OUT_PAD = N_SEG * SEG      # 1024 (lane-dense kernel output width)


def _round_up(x, m):
    return (x + m - 1) // m * m


def encoder_kernel(cnn_ref, pcm_ref, gnn_ref, vc_ref, w_ref, b_ref, out_ref):
    """One batch tile: fused Linear(100->200) + dim=1 concat into 256-aligned segments."""
    tb = out_ref.shape[0]
    zpad = jnp.zeros((tb, SEG - D_FEAT), out_ref.dtype)

    # Pass-through feature blocks -> lane-aligned 256-wide segments (offsets 0/256/512).
    out_ref[:, 0 * SEG:0 * SEG + D_FEAT] = cnn_ref[...]
    out_ref[:, 0 * SEG + D_FEAT:1 * SEG] = zpad
    out_ref[:, 1 * SEG:1 * SEG + D_FEAT] = pcm_ref[...]
    out_ref[:, 1 * SEG + D_FEAT:2 * SEG] = zpad
    out_ref[:, 2 * SEG:2 * SEG + D_FEAT] = gnn_ref[...]
    out_ref[:, 2 * SEG + D_FEAT:3 * SEG] = zpad

    # lin_vc: clean [TB,128] x [128,256] MXU tile (zero-padded K and N), f32 accumulate.
    vc = jnp.dot(vc_ref[...], w_ref[...],
                 preferred_element_type=jnp.float32) + b_ref[...]
    out_ref[:, 3 * SEG:4 * SEG] = vc.astype(out_ref.dtype)


def encoder_forward(pro_cnn, pcm_cnn, pro_gnn, data_pro_vc, w, b,
                    *, block_b=512, return_padded=False):
    """pro_cnn/pcm_cnn/pro_gnn: [B, 200]; data_pro_vc: [B, 100];
    w: [200, 100] (PyTorch nn.Linear weight layout); b: [200].
    Returns the [B, 800] concat (default) or the lane-aligned [B, 1024] layout."""
    B = pro_cnn.shape[0]
    dtype = pro_cnn.dtype

    tb = min(block_b, _round_up(B, 8))       # batch tile, multiple of 8
    b_pad = _round_up(B, tb)                 # pad ragged tail explicitly

    def pad_rows(x):
        if x.shape[0] == b_pad:
            return x
        return jnp.pad(x, ((0, b_pad - x.shape[0]), (0, 0)))

    cnn_p = pad_rows(pro_cnn)
    pcm_p = pad_rows(pcm_cnn)
    gnn_p = pad_rows(pro_gnn)
    vc_p = jnp.pad(data_pro_vc, ((0, b_pad - B), (0, K_PAD - D_VC_IN)))
    w_t = jnp.pad(w.T.astype(dtype), ((0, K_PAD - D_VC_IN), (0, SEG - D_FEAT)))
    b2 = jnp.pad(b.reshape(1, D_FEAT).astype(dtype), ((0, 0), (0, SEG - D_FEAT)))

    batch_spec = lambda width: pl.BlockSpec((tb, width), lambda i: (i, 0))
    resident = lambda shape: pl.BlockSpec(shape, lambda i: (0, 0))

    out_padded = pl.pallas_call(
        encoder_kernel,
        out_shape=jax.ShapeDtypeStruct((b_pad, D_OUT_PAD), dtype),
        grid=(b_pad // tb,),
        in_specs=[
            batch_spec(D_FEAT),            # pro_cnn
            batch_spec(D_FEAT),            # pcm_cnn
            batch_spec(D_FEAT),            # pro_gnn
            batch_spec(K_PAD),             # data_pro_vc (K padded 100->128)
            resident((K_PAD, SEG)),        # w^T padded [128, 256], VMEM-resident
            resident((1, SEG)),            # bias padded [1, 256], VMEM-resident
        ],
        out_specs=batch_spec(D_OUT_PAD),
        compiler_params=pltpu.CompilerParams(
            dimension_semantics=("parallel",)),
    )(cnn_p, pcm_p, gnn_p, vc_p, w_t, b2)

    out_padded = out_padded[:B]
    if return_padded:
        # [B, 1024]: segments at 256-stride; columns 200..255 of each segment are zero.
        return out_padded
    # Strict module semantics: torch.cat(..., dim=1) -> [B, 800].
    return out_padded.reshape(B, N_SEG, SEG)[:, :, :D_FEAT].reshape(B, D_OUT)


if __name__ == "__main__":
    key = jax.random.PRNGKey(0)
    k1, k2, k3, k4, kw, kb = jax.random.split(key, 6)

    B = 8
    pro_cnn = jax.random.normal(k1, (B, D_FEAT), jnp.float32)
    pcm_cnn = jax.random.normal(k2, (B, D_FEAT), jnp.float32)
    pro_gnn = jax.random.normal(k3, (B, D_FEAT), jnp.float32)
    data_pro_vc = jax.random.normal(k4, (B, D_VC_IN), jnp.float32)

    # Deterministic Linear(100, 200) parameters (PyTorch-style uniform init bound).
    bound = 1.0 / jnp.sqrt(D_VC_IN)
    w = jax.random.uniform(kw, (D_FEAT, D_VC_IN), jnp.float32, -bound, bound)
    bias = jax.random.uniform(kb, (D_FEAT,), jnp.float32, -bound, bound)

    out = encoder_forward(pro_cnn, pcm_cnn, pro_gnn, data_pro_vc, w, bias)
    out = jax.block_until_ready(out)

    ref = jnp.concatenate(
        [pro_cnn, pcm_cnn, pro_gnn,
         jnp.dot(data_pro_vc, w.T, preferred_element_type=jnp.float32) + bias],
        axis=1)
    assert out.shape == (B, D_OUT)
    assert jnp.allclose(out, ref, atol=1e-5, rtol=1e-5)

    # Ragged-tail check: batch not a multiple of the batch tile (exercises pad + slice).
    B2 = 13
    k5, k6, k7, k8 = jax.random.split(jax.random.PRNGKey(1), 4)
    a1 = jax.random.normal(k5, (B2, D_FEAT), jnp.float32)
    a2 = jax.random.normal(k6, (B2, D_FEAT), jnp.float32)
    a3 = jax.random.normal(k7, (B2, D_FEAT), jnp.float32)
    a4 = jax.random.normal(k8, (B2, D_VC_IN), jnp.float32)
    out2 = jax.block_until_ready(
        encoder_forward(a1, a2, a3, a4, w, bias, block_b=8))
    ref2 = jnp.concatenate(
        [a1, a2, a3,
         jnp.dot(a4, w.T, preferred_element_type=jnp.float32) + bias], axis=1)
    assert out2.shape == (B2, D_OUT)
    assert jnp.allclose(out2, ref2, atol=1e-5, rtol=1e-5)

    print("KERNEL_OK")
</pallas_src>

<mosaic_0001>
module attributes {stable_mosaic.version = 11 : i64} {
  func.func @encoder_kernel(%arg0: i32, %arg1: memref<8x200xf32, #tpu.memory_space<vmem>>, %arg2: memref<8x200xf32, #tpu.memory_space<vmem>>, %arg3: memref<8x200xf32, #tpu.memory_space<vmem>>, %arg4: memref<8x128xf32, #tpu.memory_space<vmem>>, %arg5: memref<128x256xf32, #tpu.memory_space<vmem>>, %arg6: memref<1x256xf32, #tpu.memory_space<vmem>>, %arg7: memref<8x1024xf32, #tpu.memory_space<vmem>>) attributes {dimension_semantics = [#tpu.dimension_semantics<parallel>], iteration_bounds = array<i64: 1>, scalar_prefetch = 0 : i64, scratch_operands = 0 : i64, tpu.core_type = #tpu.core_type<tc>, window_params = [{transform_indices = @transform_0, window_bounds = array<i64: 8, 200>}, {transform_indices = @transform_1, window_bounds = array<i64: 8, 200>}, {transform_indices = @transform_2, window_bounds = array<i64: 8, 200>}, {transform_indices = @transform_3, window_bounds = array<i64: 8, 128>}, {pipeline_mode = #tpu.pipeline_mode<synchronous>, transform_indices = @transform_4, window_bounds = array<i64: 128, 256>}, {pipeline_mode = #tpu.pipeline_mode<synchronous>, transform_indices = @transform_5, window_bounds = array<i64: 1, 256>}, {transform_indices = @transform_6, window_bounds = array<i64: 8, 1024>}]} {
    %cst = arith.constant 0.000000e+00 : f32
    %0 = vector.broadcast %cst : f32 to vector<8x56xf32>
    %c0 = arith.constant 0 : index
    %c0_0 = arith.constant 0 : index
    %1 = vector.load %arg1[%c0, %c0_0] : memref<8x200xf32, #tpu.memory_space<vmem>>, vector<8x200xf32>
    %c0_1 = arith.constant 0 : index
    %c0_2 = arith.constant 0 : index
    %2 = vector.load %arg7[%c0_1, %c0_2] : memref<8x1024xf32, #tpu.memory_space<vmem>>, vector<8x200xf32>
    tpu.vector_store %arg7[%c0_1, %c0_2], %1 {strides = array<i32>} : memref<8x1024xf32, #tpu.memory_space<vmem>>, vector<8x200xf32>,
    %c0_3 = arith.constant 0 : index
    %c200 = arith.constant 200 : index
    %3 = vector.load %arg7[%c0_3, %c200] : memref<8x1024xf32, #tpu.memory_space<vmem>>, vector<8x56xf32>
    tpu.vector_store %arg7[%c0_3, %c200], %0 {strides = array<i32>} : memref<8x1024xf32, #tpu.memory_space<vmem>>, vector<8x56xf32>,
    %c0_4 = arith.constant 0 : index
    %c0_5 = arith.constant 0 : index
    %4 = vector.load %arg2[%c0_4, %c0_5] : memref<8x200xf32, #tpu.memory_space<vmem>>, vector<8x200xf32>
    %c0_6 = arith.constant 0 : index
    %c256 = arith.constant 256 : index
    %5 = vector.load %arg7[%c0_6, %c256] : memref<8x1024xf32, #tpu.memory_space<vmem>>, vector<8x200xf32>
    tpu.vector_store %arg7[%c0_6, %c256], %4 {strides = array<i32>} : memref<8x1024xf32, #tpu.memory_space<vmem>>, vector<8x200xf32>,
    %c0_7 = arith.constant 0 : index
    %c456 = arith.constant 456 : index
    %6 = vector.load %arg7[%c0_7, %c456] : memref<8x1024xf32, #tpu.memory_space<vmem>>, vector<8x56xf32>
    tpu.vector_store %arg7[%c0_7, %c456], %0 {strides = array<i32>} : memref<8x1024xf32, #tpu.memory_space<vmem>>, vector<8x56xf32>,
    %c0_8 = arith.constant 0 : index
    %c0_9 = arith.constant 0 : index
    %7 = vector.load %arg3[%c0_8, %c0_9] : memref<8x200xf32, #tpu.memory_space<vmem>>, vector<8x200xf32>
    %c0_10 = arith.constant 0 : index
    %c512 = arith.constant 512 : index
    %8 = vector.load %arg7[%c0_10, %c512] : memref<8x1024xf32, #tpu.memory_space<vmem>>, vector<8x200xf32>
    tpu.vector_store %arg7[%c0_10, %c512], %7 {strides = array<i32>} : memref<8x1024xf32, #tpu.memory_space<vmem>>, vector<8x200xf32>,
    %c0_11 = arith.constant 0 : index
    %c712 = arith.constant 712 : index
    %9 = vector.load %arg7[%c0_11, %c712] : memref<8x1024xf32, #tpu.memory_space<vmem>>, vector<8x56xf32>
    tpu.vector_store %arg7[%c0_11, %c712], %0 {strides = array<i32>} : memref<8x1024xf32, #tpu.memory_space<vmem>>, vector<8x56xf32>,
    %c0_12 = arith.constant 0 : index
    %c0_13 = arith.constant 0 : index
    %10 = vector.load %arg4[%c0_12, %c0_13] : memref<8x128xf32, #tpu.memory_space<vmem>>, vector<8x128xf32>
    %c0_14 = arith.constant 0 : index
    %c0_15 = arith.constant 0 : index
    %11 = vector.load %arg5[%c0_14, %c0_15] : memref<128x256xf32, #tpu.memory_space<vmem>>, vector<128x256xf32>
    %cst_16 = arith.constant dense<0.000000e+00> : vector<8x256xf32>
    %12 = tpu.matmul %10, %11, %cst_16 {dimension_numbers = #tpu.dot_dimension_numbers<[1], [0], [0], [1], [0, 0, 1, 1], [], []>} : vector<8x128xf32>, vector<128x256xf32>, vector<8x256xf32> -> vector<8x256xf32>
    %c0_17 = arith.constant 0 : index
    %c0_18 = arith.constant 0 : index
    %13 = vector.load %arg6[%c0_17, %c0_18] : memref<1x256xf32, #tpu.memory_space<vmem>>, vector<1x256xf32>
    %14 = vector.broadcast %13 : vector<1x256xf32> to vector<8x256xf32>
    %15 = arith.addf %12, %14 : vector<8x256xf32>
    %c0_19 = arith.constant 0 : index
    %c768 = arith.constant 768 : index
    %16 = vector.load %arg7[%c0_19, %c768] : memref<8x1024xf32, #tpu.memory_space<vmem>>, vector<8x256xf32>
    tpu.vector_store %arg7[%c0_19, %c768], %15 {strides = array<i32>} : memref<8x1024xf32, #tpu.memory_space<vmem>>, vector<8x256xf32>,
    return
  }
  func.func @transform_0(%arg0: i32) -> (i32, i32) {
    %c0_i32 = arith.constant 0 : i32
    %c0_i32_0 = arith.constant 0 : i32
    return %arg0, %c0_i32 : i32, i32
  }
  func.func @transform_1(%arg0: i32) -> (i32, i32) {
    %c0_i32 = arith.constant 0 : i32
    %c0_i32_0 = arith.constant 0 : i32
    return %arg0, %c0_i32 : i32, i32
  }
  func.func @transform_2(%arg0: i32) -> (i32, i32) {
    %c0_i32 = arith.constant 0 : i32
    %c0_i32_0 = arith.constant 0 : i32
    return %arg0, %c0_i32 : i32, i32
  }
  func.func @transform_3(%arg0: i32) -> (i32, i32) {
    %c0_i32 = arith.constant 0 : i32
    %c0_i32_0 = arith.constant 0 : i32
    return %arg0, %c0_i32 : i32, i32
  }
  func.func @transform_4(%arg0: i32) -> (i32, i32) {
    %c0_i32 = arith.constant 0 : i32
    %c0_i32_0 = arith.constant 0 : i32
    %c0_i32_1 = arith.constant 0 : i32
    return %c0_i32, %c0_i32_0 : i32, i32
  }
  func.func @transform_5(%arg0: i32) -> (i32, i32) {
    %c0_i32 = arith.constant 0 : i32
    %c0_i32_0 = arith.constant 0 : i32
    %c0_i32_1 = arith.constant 0 : i32
    return %c0_i32, %c0_i32_0 : i32, i32
  }
  func.func @transform_6(%arg0: i32) -> (i32, i32) {
    %c0_i32 = arith.constant 0 : i32
    %c0_i32_0 = arith.constant 0 : i32
    return %arg0, %c0_i32 : i32, i32
  }
}

</mosaic_0001>

<bundles_post_ra>
// kernel: tpu_custom_call.1
= control target key start
LH: loop header
LB: loop body
LE: loop exit
PB: predicated region body
PF: predicated region fallthrough
CT: control target
= control target key end

     0   :  { %11 = vsyncpa [#allocation3], 0  ;;  %s505_s0 = inlined_call_operand.hbm [shape: f32[8,200], index: 0, kind: input, shape index: {}]   ;;  %s506_s1 = inlined_call_operand.hbm [shape: f32[8,200], index: 1, kind: input, shape index: {}]   ;;  %s507_s2 = inlined_call_operand.hbm [shape: f32[8,200], index: 2, kind: input, shape index: {}]   ;;  %s508_s3 = inlined_call_operand.vmem [shape: f32[8,128], index: 3, kind: input, shape index: {}]   ;;  %s509_s4 = inlined_call_operand.hbm [shape: f32[128,256], index: 4, kind: input, shape index: {}]   ;;  %s510_s5 = inlined_call_operand.vmem [shape: f32[1,256], index: 5, kind: input, shape index: {}]   ;;  %s511_s6 = inlined_call_operand.hbm [shape: f32[8,1024], index: 6, kind: output, shape index: {}]  }
   0x1   :  { %12 = vsyncpa [#allocation6], 0 }
   0x2   :  { %13 = vsyncpa [#allocation9], 0 }
   0x3   :  { %14 = vsyncpa [#allocation4], 0  ;;  %s383_s21 = smov [#allocation5]   ;;  %s384_s23 = smov [#allocation2]  }
   0x4   :  { %s31_s22 = sshll.u32 %s383_s21, 4  ;;  %s21_s24 = sshll.u32 %s384_s23, 4  ;;  %s32_s22 = int_to_ptr.vmem [resolvable:$true] %s31_s22  ;;  %s22_s24 = int_to_ptr.vmem [resolvable:$true] %s21_s24 }
   0x5   :  { %s265_s27 = scalar_lea.hbm %s506_s1, 256 }
   0x6   :  { %p266_p0 = scmp.ne.s32.totalorder %s506_s1, %s265_s27  ;;  %p269_p1 = scmp.lt.u32.totalorder %s265_s27, %s506_s1 }
   0x8   :  { %p271_p2 = pnand %p269_p1, %p266_p0 }
   0xa   :  { %274 = shalt.err (!%p271_p2)
}
   0xb   :  { %s275_s8 = scalar_lea.vmem %s32_s22, 256  ;;  %p280_p4 = scmp.lt.s32.totalorder %s32_s22, %s32_s22 }
   0xc   :  { %p276_p3 = scmp.ne.s32.totalorder %s32_s22, %s275_s8  ;;  %p281_p5 = scmp.lt.s32.totalorder %s275_s8, %s275_s8 }
   0xe   :  { %p282_p6 = por %p281_p5, %p280_p4 }
  0x10   :  { %p283_p7 = pnand %p282_p6, %p276_p3 }
  0x12   :  { %286 = shalt.err (!%p283_p7)
}
  0x13   :  { %34 = dma.hbm_to_vmem [thread:$0]  %s506_s1, 256, %s32_s22, [#allocation6]  }
  0x14   :  { %s287_s13 = scalar_lea.hbm %s505_s0, 256 }
  0x15   :  { %p288_p8 = scmp.ne.s32.totalorder %s505_s0, %s287_s13  ;;  %p291_p9 = scmp.lt.u32.totalorder %s287_s13, %s505_s0 }
  0x17   :  { %p293_p10 = pnand %p291_p9, %p288_p8 }
  0x19   :  { %296 = shalt.err (!%p293_p10)
}
  0x1a   :  { %s297_s18 = scalar_lea.vmem %s22_s24, 256  ;;  %p302_p12 = scmp.lt.s32.totalorder %s22_s24, %s22_s24 }
  0x1b   :  { %p298_p11 = scmp.ne.s32.totalorder %s22_s24, %s297_s18  ;;  %p303_p13 = scmp.lt.s32.totalorder %s297_s18, %s297_s18 }
  0x1d   :  { %p304_p0 = por %p303_p13, %p302_p12 }
  0x1f   :  { %p305_p1 = pnand %p304_p0, %p298_p11 }
  0x21   :  { %308 = shalt.err (!%p305_p1)
}
  0x22   :  { %24 = dma.hbm_to_vmem [thread:$0]  %s505_s0, 256, %s22_s24, [#allocation3]  }
  0x23   :  { %s385_s20 = smov [#allocation7]   ;;  %s386_s22 = smov [#allocation8]  }
  0x24   :  { %s41_s21 = sshll.u32 %s385_s20, 4  ;;  %s52_s23 = sshll.u32 %s386_s22, 4  ;;  %s42_s21 = int_to_ptr.vmem [resolvable:$true] %s41_s21  ;;  %s450_s23 = int_to_ptr.vmem [resolvable:$true] %s52_s23 }
  0x25   :  { %s309_s27 = scalar_lea.hbm %s507_s2, 256 }
  0x26   :  { %p310_p2 = scmp.ne.s32.totalorder %s507_s2, %s309_s27  ;;  %p313_p3 = scmp.lt.u32.totalorder %s309_s27, %s507_s2 }
  0x28   :  { %p315_p4 = pnand %p313_p3, %p310_p2 }
  0x2a   :  { %318 = shalt.err (!%p315_p4)
}
  0x2b   :  { %s319_s0 = scalar_lea.vmem %s42_s21, 256  ;;  %p324_p6 = scmp.lt.s32.totalorder %s42_s21, %s42_s21 }
  0x2c   :  { %p320_p5 = scmp.ne.s32.totalorder %s42_s21, %s319_s0  ;;  %p325_p7 = scmp.lt.s32.totalorder %s319_s0, %s319_s0 }
  0x2e   :  { %p326_p8 = por %p325_p7, %p324_p6 }
  0x30   :  { %p327_p9 = pnand %p326_p8, %p320_p5 }
  0x32   :  { %330 = shalt.err (!%p327_p9)
}
  0x33   :  { %44 = dma.hbm_to_vmem [thread:$0]  %s507_s2, 256, %s42_s21, [#allocation6]  }
  0x34   :  { %s331_s11 = scalar_lea.hbm %s509_s4, 4096 }
  0x35   :  { %p332_p10 = scmp.ne.s32.totalorder %s509_s4, %s331_s11  ;;  %p335_p11 = scmp.lt.u32.totalorder %s331_s11, %s509_s4 }
  0x37   :  { %p337_p12 = pnand %p335_p11, %p332_p10 }
  0x39   :  { %340 = shalt.err (!%p337_p12)
}
  0x3a   :  { %s341_s16 = scalar_lea.vmem %s450_s23, 4096  ;;  %p346_p0 = scmp.lt.s32.totalorder %s450_s23, %s450_s23 }
  0x3b   :  { %p342_p13 = scmp.ne.s32.totalorder %s450_s23, %s341_s16  ;;  %p347_p1 = scmp.lt.s32.totalorder %s341_s16, %s341_s16 }
  0x3d   :  { %p348_p2 = por %p347_p1, %p346_p0 }
  0x3f   :  { %p349_p3 = pnand %p348_p2, %p342_p13 }
  0x41   :  { %352 = shalt.err (!%p349_p3)
}
  0x42   :  { %s387_s2 = smov 256   ;;  %s388_s17 = smov 16  }
  0x43   :  { %58 = dma.hbm_to_vmem [thread:$0]  %s509_s4, 4096, %s450_s23, [#allocation9], %s387_s2, %s387_s2, %s388_s17  }
  0x44   :  { %375 = dma.done.wait [#allocation3], 256  }
  0x45   :  { %376 = vsyncadd [#allocation3], 4294967040 }
  0x46   :  { %377 = dma.done.wait [#allocation6], 512  }
  0x47   :  { %378 = vsyncadd [#allocation6], 4294966784 }
  0x48   :  { %379 = dma.done.wait [#allocation9], 4096  }
  0x49   :  { %380 = vsyncadd [#allocation9], 4294963200  ;;  %v389_v0 = vmov 0.0   ;;  %v92_v1 = vld [vmem:[#allocation8 + $0x8] sm:$0xff]  ;;  %v94_v2 = vld [vmem:[#allocation8 + $0x18] sm:$0xff]  ;;  %vm76_vm0 = vcmask 588800   ;;  %v125_v56 = vlaneseq }
  0x4a   :  { %199 = vmatprep.mubr.f32.mxu0 %v389_v0  ;;  %v91_v3 = vld [vmem:[#allocation8] sm:$0xff]  ;;  %v225_v4 = vpack.c.bf16 %v94_v2, %v92_v1  ;;  %v93_v5 = vld [vmem:[#allocation8 + $0x10] sm:$0xff]  ;;  %v96_v6 = vld [vmem:[#allocation8 + $0x28] sm:$0xff]  ;;  %vm78_vm1 = vcmask 1048128   ;;  %s390_s22 = smov [#allocation10]  }
  0x4b   :  { %v98_v7 = vld [vmem:[#allocation8 + $0x38] sm:$0xff]  ;;  %v227_v8 = vpack.c.bf16 %v93_v5, %v91_v3  ;;  %v95_v10 = vld [vmem:[#allocation8 + $0x20] sm:$0xff]  ;;  %v97_v11 = vld [vmem:[#allocation8 + $0x30] sm:$0xff]  ;;  %v126_v57 = vshrl.u32 %v125_v56, 7  ;;  %s214_s23 = sshll.u32 %s390_s22, 4  ;;  %s215_s23 = int_to_ptr.vmem [resolvable:$true] %s214_s23 }
  0x4c   :  { %v229_v9 = vpack.c.bf16 %v98_v7, %v96_v6  ;;  %v100_v12 = vld [vmem:[#allocation8 + $0x48] sm:$0xff]  ;;  %226 = vmatprep.subr.bf16.mxu0 %v225_v4  ;;  %v102_v13 = vld [vmem:[#allocation8 + $0x58] sm:$0xff]  ;;  %v231_v14 = vpack.c.bf16 %v97_v11, %v95_v10  ;;  %v99_v16 = vld [vmem:[#allocation8 + $0x40] sm:$0xff]  ;;  %p358_p5 = scmp.lt.s32.totalorder %s215_s23, %s215_s23 }
  0x4d   :  { %228 = vmatpush1.bf16.msra.mxu0 %v227_v8  ;;  %v233_v15 = vpack.c.bf16 %v102_v13, %v100_v12  ;;  %v101_v17 = vld [vmem:[#allocation8 + $0x50] sm:$0xff]  ;;  %v104_v18 = vld [vmem:[#allocation8 + $0x68] sm:$0xff]  ;;  %v106_v19 = vld [vmem:[#allocation8 + $0x78] sm:$0xff]  ;;  %v127_v58 = vsub.s32 0, %v126_v57  ;;  %v131_v60 = vsub.s32 1, %v126_v57 }
  0x4e   :  { %230 = vmatprep.subr.bf16.mxu0 %v229_v9  ;;  %v235_v20 = vpack.c.bf16 %v101_v17, %v99_v16  ;;  %v237_v21 = vpack.c.bf16 %v106_v19, %v104_v18  ;;  %v103_v22 = vld [vmem:[#allocation8 + $0x60] sm:$0xff]  ;;  %v105_v23 = vld [vmem:[#allocation8 + $0x70] sm:$0xff]  ;;  %v108_v24 = vld [vmem:[#allocation8 + $0x88] sm:$0xff] }
  0x4f   :  { %v110_v25 = vld [vmem:[#allocation8 + $0x98] sm:$0xff]  ;;  %v81_v27 = vld [vmem:[#allocation5 + $0x8] sm:$0xff]  ;;  %v239_v29 = vpack.c.bf16 %v105_v23, %v103_v22  ;;  %v107_v31 = vld [vmem:[#allocation8 + $0x80] sm:$0xff] }
  0x50   :  { %v74_v26 = vld [vmem:[#allocation2 + $0x8] sm:$0xff]  ;;  %83 = vst.msk [vmem:[#allocation10 + $0x18] sm:$0xff] %vm76_vm0, %v81_v27  ;;  %v241_v30 = vpack.c.bf16 %v110_v25, %v108_v24  ;;  %v109_v32 = vld [vmem:[#allocation8 + $0x90] sm:$0xff]  ;;  %v112_v33 = vld [vmem:[#allocation8 + $0xa8] sm:$0xff] }
  0x51   :  { %232 = vmatpush1.bf16.msra.mxu0 %v231_v14  ;;  %77 = vst.msk [vmem:[#allocation10 + $0x8] sm:$0xff] %vm76_vm0, %v74_v26  ;;  %v86_v28 = vld [vmem:[#allocation7 + $0x8] sm:$0xff]  ;;  %v243_v35 = vpack.c.bf16 %v109_v32, %v107_v31  ;;  %v111_v37 = vld [vmem:[#allocation8 + $0xa0] sm:$0xff]  ;;  %v113_v38 = vld [vmem:[#allocation8 + $0xb0] sm:$0xff] }
  0x52   :  { %234 = vmatprep.subr.bf16.mxu0 %v233_v15  ;;  %79 = vst.msk [vmem:[#allocation10 + $0x8] sm:$0xff] %vm78_vm1, %v389_v0  ;;  %84 = vst.msk [vmem:[#allocation10 + $0x18] sm:$0xff] %vm78_vm1, %v389_v0  ;;  %v114_v34 = vld [vmem:[#allocation8 + $0xb8] sm:$0xff]  ;;  %v116_v39 = vld [vmem:[#allocation8 + $0xc8] sm:$0xff]  ;;  %v247_v41 = vpack.c.bf16 %v113_v38, %v111_v37 }
  0x53   :  { %88 = vst.msk [vmem:[#allocation10 + $0x28] sm:$0xff] %vm76_vm0, %v86_v28  ;;  %v245_v36 = vpack.c.bf16 %v114_v34, %v112_v33  ;;  %v118_v40 = vld [vmem:[#allocation8 + $0xd8] sm:$0xff]  ;;  %v115_v43 = vld [vmem:[#allocation8 + $0xc0] sm:$0xff]  ;;  %v117_v44 = vld [vmem:[#allocation8 + $0xd0] sm:$0xff] }
  0x54   :  { %89 = vst.msk [vmem:[#allocation10 + $0x28] sm:$0xff] %vm78_vm1, %v389_v0  ;;  %v249_v42 = vpack.c.bf16 %v118_v40, %v116_v39  ;;  %v120_v45 = vld [vmem:[#allocation8 + $0xe8] sm:$0xff]  ;;  %v122_v46 = vld [vmem:[#allocation8 + $0xf8] sm:$0xff]  ;;  %v251_v47 = vpack.c.bf16 %v117_v44, %v115_v43  ;;  %v119_v49 = vld [vmem:[#allocation8 + $0xe0] sm:$0xff] }
  0x55   :  { %236 = vmatpush1.bf16.msra.mxu0 %v235_v20  ;;  %v253_v48 = vpack.c.bf16 %v122_v46, %v120_v45  ;;  %v121_v50 = vld [vmem:[#allocation8 + $0xf0] sm:$0xff]  ;;  %v80_v54 = vld [vmem:[#allocation5] sm:$0xff] }
  0x56   :  { %238 = vmatprep.subr.bf16.mxu0 %v237_v21  ;;  %v255_v51 = vpack.c.bf16 %v121_v50, %v119_v49  ;;  %v90_v52 = vld [vmem:[%s508_s3] sm:$0xff]  ;;  %82 = vst [vmem:[#allocation10 + $0x10] sm:$0xff] %v80_v54  ;;  %s353_s3 = scalar_lea.vmem %s215_s23, 1024 }
  0x57   :  { %v73_v53 = vld [vmem:[#allocation2] sm:$0xff]  ;;  %p354_p4 = scmp.ne.s32.totalorder %s215_s23, %s353_s3  ;;  %p359_p6 = scmp.lt.s32.totalorder %s353_s3, %s353_s3 }
  0x58   :  { %v85_v55 = vld [vmem:[#allocation7] sm:$0xff]  ;;  %75 = vst [vmem:[#allocation10] sm:$0xff] %v73_v53 }
  0x59   :  { %240 = vmatpush1.bf16.msra.mxu0 %v239_v29  ;;  %87 = vst [vmem:[#allocation10 + $0x20] sm:$0xff] %v85_v55  ;;  %v123_v59 = vld [vmem:[%s510_s5] sm:$0x3]  ;;  %p360_p7 = por %p359_p6, %p358_p5 }
  0x5a   :  { %242 = vmatprep.subr.bf16.mxu0 %v241_v30  ;;  %v128_v61 = vrot.slane %v123_v59, %v127_v58  ;;  %v132_v62 = vrot.slane %v123_v59, %v131_v60 }
  0x5b   :  { %p361_p8 = pnand %p360_p7, %p354_p4 }
  0x5d   :  { %244 = vmatpush1.bf16.msra.mxu0 %v243_v35 }
  0x5e   :  { %246 = vmatprep.subr.bf16.mxu0 %v245_v36 }
  0x61   :  { %248 = vmatpush1.bf16.msra.mxu0 %v247_v41 }
  0x62   :  { %250 = vmatprep.subr.bf16.mxu0 %v249_v42 }
  0x65   :  { %252 = vmatpush1.bf16.msra.mxu0 %v251_v47 }
  0x66   :  { %254 = vmatprep.subr.bf16.mxu0 %v253_v48 }
  0x69   :  { %256 = vmatpush1.bf16.msra.mxu0 %v255_v51 }
  0x6c   :  { %200 = vmatmul.mubr.f32.vlgmr.msra.gmra.mrb[0].mxu0 %v90_v52 }
 0x13f   :  { %v201_v63 = vpop.f32.mrb[0].mxu0 }
 0x140   :  { %v202_v0 = vadd.f32 %v201_v63, %v128_v61  ;;  %v203_v1 = vpop.f32.mrb[1].mxu0 }
 0x141   :  { %v204_v2 = vadd.f32 %v203_v1, %v132_v62 }
 0x142   :  { %206 = vst [vmem:[#allocation10 + $0x30] sm:$0xff] %v202_v0 }
 0x143   :  { %207 = vst [vmem:[#allocation10 + $0x38] sm:$0xff] %v204_v2 }
 0x144   :  { %364 = shalt.err (!%p361_p8)
}
 0x145   :  { %s365_s26 = scalar_lea.hbm %s511_s6, 1024 }
 0x146   :  { %p366_p9 = scmp.ne.s32.totalorder %s511_s6, %s365_s26  ;;  %p369_p10 = scmp.lt.u32.totalorder %s365_s26, %s511_s6 }
 0x148   :  { %p371_p11 = pnand %p369_p10, %p366_p9 }
 0x14a   :  { %374 = shalt.err (!%p371_p11)
}
 0x14b   :  { %217 = dma.vmem_to_hbm [thread:$0]  %s215_s23, 1024, %s511_s6, [#allocation4]  }
 0x14c   :  { %381 = dma.done.wait [#allocation4], 1024  }
 0x14d   :  { %382 = vsyncadd [#allocation4], 4294966272 }
 0x14e   :  { %221 = vsyncpa [#allocation3], 1 }
 0x14f   :  { %222 = vsyncpa [#allocation6], 1 }
 0x150   :  { %223 = vsyncpa [#allocation9], 1 }
 0x151   :  { %224 = vsyncpa [#allocation4], 1 }

</bundles_post_ra>
